<compile_context>
chip_gen: v7x
topology: tpu7x:2x2x1
jax: 0.10.0
libtpu: 0.0.40
codegen_flags: <defaults>
</compile_context>

<pallas_src>
import jax
import jax.numpy as jnp
from jax.experimental import pallas as pl
from jax.experimental.pallas import tpu as pltpu

# ---- padded / packed layout constants -------------------------------------
IN_P = 8        # input features padded 5 -> 8   (sublane aligned)
HID_P = 128     # hidden padded 32 -> 128        (full lane width)
OUT_P = 128     # output padded 2 -> 128         (lane-dense output slab)

W1_OFF = 0                      # rows [0, 8)    : W1  (IN_P,  HID_P)
W2_OFF = IN_P                   # rows [8, 136)  : W2  (HID_P, HID_P)
W3_OFF = IN_P + HID_P           # rows [136, 264): W3  (HID_P, OUT_P)
B_OFF = IN_P + 2 * HID_P        # rows 264/265/266 : b1 / b2 / b3 (1, 128) each
P_ROWS = B_OFF + 8              # 272 total rows (multiple of 8)


def _round_up(x, m):
    return ((x + m - 1) // m) * m


# ---- kernel ----------------------------------------------------------------
def hrn_kernel(x_ref, p_ref, o_ref):
    x = x_ref[...]                                       # (TILE_B, IN_P)

    w1 = p_ref[W1_OFF:W1_OFF + IN_P, :]                  # (IN_P,  HID_P)
    w2 = p_ref[W2_OFF:W2_OFF + HID_P, :]                 # (HID_P, HID_P)
    w3 = p_ref[W3_OFF:W3_OFF + HID_P, :]                 # (HID_P, OUT_P)
    b1 = p_ref[B_OFF + 0:B_OFF + 1, :]                   # (1, HID_P)
    b2 = p_ref[B_OFF + 1:B_OFF + 2, :]
    b3 = p_ref[B_OFF + 2:B_OFF + 3, :]

    # linear1 -> ReLU   (dropout1 has rate 0 -> identity)
    h = jnp.dot(x, w1, preferred_element_type=jnp.float32) + b1
    h = jnp.maximum(h, 0.0)
    # linear2 -> ReLU   (dropout2 has rate 0 -> identity)
    h = jnp.dot(h, w2, preferred_element_type=jnp.float32) + b2
    h = jnp.maximum(h, 0.0)
    # linear3 -> tanh(.) * 10, written as one lane-dense slab
    y = jnp.dot(h, w3, preferred_element_type=jnp.float32) + b3
    o_ref[...] = (jnp.tanh(y) * 10.0).astype(o_ref.dtype)


# ---- wrapper ----------------------------------------------------------------
def human_response_net(x, packed_params, *, output_size=2, tile_b=512):
    """x: (B, input_size<=8) float32.  packed_params: (P_ROWS, 128) float32 slab."""
    B, in_dim = x.shape

    # batch tile: multiple of 8, capped at tile_b (sized for v7x's smaller VMEM)
    tb = min(tile_b, _round_up(max(B, 1), 8))
    Bp = _round_up(B, tb)

    # pad features -> IN_P lanes, batch -> multiple of the tile
    xp = jnp.zeros((Bp, IN_P), jnp.float32).at[:B, :in_dim].set(x)

    out = pl.pallas_call(
        hrn_kernel,
        out_shape=jax.ShapeDtypeStruct((Bp, OUT_P), jnp.float32),
        grid=(Bp // tb,),
        in_specs=[
            pl.BlockSpec((tb, IN_P), lambda i: (i, 0)),          # batch-tiled state
            pl.BlockSpec((P_ROWS, HID_P), lambda i: (0, 0)),     # resident param slab
        ],
        out_specs=pl.BlockSpec((tb, OUT_P), lambda i: (i, 0)),   # lane-dense output slab
        compiler_params=pltpu.CompilerParams(
            dimension_semantics=("parallel",)),
    )(xp, packed_params)

    return out[:B, :output_size]


# ---- params ------------------------------------------------------------------
def init_params(key, input_size=5, hidden_size=32, output_size=2):
    """PyTorch-like uniform fan-in init; weights stored (in, out)."""
    def linear(k, fan_in, fan_out):
        kw, kb = jax.random.split(k)
        bound = float(fan_in) ** -0.5
        w = jax.random.uniform(kw, (fan_in, fan_out), jnp.float32, -bound, bound)
        b = jax.random.uniform(kb, (fan_out,), jnp.float32, -bound, bound)
        return w, b

    k1, k2, k3 = jax.random.split(key, 3)
    w1, b1 = linear(k1, input_size, hidden_size)
    w2, b2 = linear(k2, hidden_size, hidden_size)
    w3, b3 = linear(k3, hidden_size, output_size)
    return dict(w1=w1, b1=b1, w2=w2, b2=b2, w3=w3, b3=b3)


def pack_params(p):
    """Zero-pad all weights/biases to (., 128) and stack into one (272, 128) slab."""
    in_dim, hid = p["w1"].shape
    out_dim = p["w3"].shape[1]
    packed = jnp.zeros((P_ROWS, HID_P), jnp.float32)
    packed = packed.at[W1_OFF:W1_OFF + in_dim, :hid].set(p["w1"])
    packed = packed.at[W2_OFF:W2_OFF + hid, :hid].set(p["w2"])
    packed = packed.at[W3_OFF:W3_OFF + hid, :out_dim].set(p["w3"])
    packed = packed.at[B_OFF + 0, :hid].set(p["b1"])
    packed = packed.at[B_OFF + 1, :hid].set(p["b2"])
    packed = packed.at[B_OFF + 2, :out_dim].set(p["b3"])
    return packed


def reference_forward(x, p):
    h = jnp.maximum(x @ p["w1"] + p["b1"], 0.0)
    h = jnp.maximum(h @ p["w2"] + p["b2"], 0.0)
    return jnp.tanh(h @ p["w3"] + p["b3"]) * 10.0


if __name__ == "__main__":
    key = jax.random.PRNGKey(0)
    kx, kp = jax.random.split(key)

    B, input_size, hidden_size, output_size = 8, 5, 32, 2
    # HRC robot state, small deterministic example batch
    x = jax.random.uniform(kx, (B, input_size), jnp.float32, minval=-2.0, maxval=2.0)
    params = init_params(kp, input_size, hidden_size, output_size)
    packed = pack_params(params)

    y = human_response_net(x, packed, output_size=output_size)
    jax.block_until_ready(y)

    # sanity check against plain-JAX reference
    y_ref = reference_forward(x, params)
    assert y.shape == (B, output_size)
    assert jnp.allclose(y, y_ref, atol=1e-5)
    assert bool(jnp.all(jnp.abs(y) <= 10.0))   # tanh(.)*10 range

    print("KERNEL_OK")
</pallas_src>

<mosaic_0001>
module attributes {stable_mosaic.version = 11 : i64} {
  func.func @hrn_kernel(%arg0: i32, %arg1: memref<8x8xf32, #tpu.memory_space<vmem>>, %arg2: memref<272x128xf32, #tpu.memory_space<vmem>>, %arg3: memref<8x128xf32, #tpu.memory_space<vmem>>) attributes {dimension_semantics = [#tpu.dimension_semantics<parallel>], iteration_bounds = array<i64: 1>, scalar_prefetch = 0 : i64, scratch_operands = 0 : i64, tpu.core_type = #tpu.core_type<tc>, window_params = [{transform_indices = @transform_0, window_bounds = array<i64: 8, 8>}, {pipeline_mode = #tpu.pipeline_mode<synchronous>, transform_indices = @transform_1, window_bounds = array<i64: 272, 128>}, {transform_indices = @transform_2, window_bounds = array<i64: 8, 128>}]} {
    %c0 = arith.constant 0 : index
    %c0_0 = arith.constant 0 : index
    %0 = vector.load %arg1[%c0, %c0_0] : memref<8x8xf32, #tpu.memory_space<vmem>>, vector<8x8xf32>
    %c0_1 = arith.constant 0 : index
    %c0_2 = arith.constant 0 : index
    %1 = vector.load %arg2[%c0_1, %c0_2] : memref<272x128xf32, #tpu.memory_space<vmem>>, vector<8x128xf32>
    %c8 = arith.constant 8 : index
    %c0_3 = arith.constant 0 : index
    %2 = vector.load %arg2[%c8, %c0_3] : memref<272x128xf32, #tpu.memory_space<vmem>>, vector<128x128xf32>
    %c136 = arith.constant 136 : index
    %c0_4 = arith.constant 0 : index
    %3 = vector.load %arg2[%c136, %c0_4] : memref<272x128xf32, #tpu.memory_space<vmem>>, vector<128x128xf32>
    %c264 = arith.constant 264 : index
    %c0_5 = arith.constant 0 : index
    %4 = vector.load %arg2[%c264, %c0_5] : memref<272x128xf32, #tpu.memory_space<vmem>>, vector<1x128xf32>
    %c265 = arith.constant 265 : index
    %c0_6 = arith.constant 0 : index
    %5 = vector.load %arg2[%c265, %c0_6] : memref<272x128xf32, #tpu.memory_space<vmem>>, vector<1x128xf32>
    %c266 = arith.constant 266 : index
    %c0_7 = arith.constant 0 : index
    %6 = vector.load %arg2[%c266, %c0_7] : memref<272x128xf32, #tpu.memory_space<vmem>>, vector<1x128xf32>
    %cst = arith.constant dense<0.000000e+00> : vector<8x128xf32>
    %7 = tpu.matmul %0, %1, %cst {dimension_numbers = #tpu.dot_dimension_numbers<[1], [0], [0], [1], [0, 0, 1, 1], [], []>} : vector<8x8xf32>, vector<8x128xf32>, vector<8x128xf32> -> vector<8x128xf32>
    %8 = vector.broadcast %4 : vector<1x128xf32> to vector<8x128xf32>
    %9 = arith.addf %7, %8 : vector<8x128xf32>
    %cst_8 = arith.constant 0.000000e+00 : f32
    %10 = vector.broadcast %cst_8 : f32 to vector<8x128xf32>
    %11 = arith.maximumf %9, %10 : vector<8x128xf32>
    %cst_9 = arith.constant dense<0.000000e+00> : vector<8x128xf32>
    %12 = tpu.matmul %11, %2, %cst_9 {dimension_numbers = #tpu.dot_dimension_numbers<[1], [0], [0], [1], [0, 0, 1, 1], [], []>} : vector<8x128xf32>, vector<128x128xf32>, vector<8x128xf32> -> vector<8x128xf32>
    %13 = vector.broadcast %5 : vector<1x128xf32> to vector<8x128xf32>
    %14 = arith.addf %12, %13 : vector<8x128xf32>
    %cst_10 = arith.constant 0.000000e+00 : f32
    %15 = vector.broadcast %cst_10 : f32 to vector<8x128xf32>
    %16 = arith.maximumf %14, %15 : vector<8x128xf32>
    %cst_11 = arith.constant dense<0.000000e+00> : vector<8x128xf32>
    %17 = tpu.matmul %16, %3, %cst_11 {dimension_numbers = #tpu.dot_dimension_numbers<[1], [0], [0], [1], [0, 0, 1, 1], [], []>} : vector<8x128xf32>, vector<128x128xf32>, vector<8x128xf32> -> vector<8x128xf32>
    %18 = vector.broadcast %6 : vector<1x128xf32> to vector<8x128xf32>
    %19 = arith.addf %17, %18 : vector<8x128xf32>
    %20 = math.tanh %19 : vector<8x128xf32>
    %cst_12 = arith.constant 1.000000e+01 : f32
    %21 = vector.broadcast %cst_12 : f32 to vector<8x128xf32>
    %22 = arith.mulf %20, %21 : vector<8x128xf32>
    %c0_13 = arith.constant 0 : index
    %c0_14 = arith.constant 0 : index
    %23 = vector.load %arg3[%c0_13, %c0_14] : memref<8x128xf32, #tpu.memory_space<vmem>>, vector<8x128xf32>
    tpu.vector_store %arg3[%c0_13, %c0_14], %22 {strides = array<i32>} : memref<8x128xf32, #tpu.memory_space<vmem>>, vector<8x128xf32>,
    return
  }
  func.func @transform_0(%arg0: i32) -> (i32, i32) {
    %c0_i32 = arith.constant 0 : i32
    %c0_i32_0 = arith.constant 0 : i32
    return %arg0, %c0_i32 : i32, i32
  }
  func.func @transform_1(%arg0: i32) -> (i32, i32) {
    %c0_i32 = arith.constant 0 : i32
    %c0_i32_0 = arith.constant 0 : i32
    %c0_i32_1 = arith.constant 0 : i32
    return %c0_i32, %c0_i32_0 : i32, i32
  }
  func.func @transform_2(%arg0: i32) -> (i32, i32) {
    %c0_i32 = arith.constant 0 : i32
    %c0_i32_0 = arith.constant 0 : i32
    return %arg0, %c0_i32 : i32, i32
  }
}

</mosaic_0001>

<bundles_post_ra>
// kernel: tpu_custom_call.1
= control target key start
LH: loop header
LB: loop body
LE: loop exit
PB: predicated region body
PF: predicated region fallthrough
CT: control target
= control target key end

     0   :  { %7 = vsyncpa [#allocation3], 0  ;;  %s652_s0 = inlined_call_operand.hbm [shape: f32[8,8], index: 0, kind: input, shape index: {}]   ;;  %s653_s1 = inlined_call_operand.hbm [shape: f32[272,128], index: 1, kind: input, shape index: {}]   ;;  %s654_s2 = inlined_call_operand.hbm [shape: f32[8,128], index: 2, kind: output, shape index: {}]  }
   0x1   :  { %8 = vsyncpa [#allocation6], 0 }
   0x2   :  { %9 = vsyncpa [#allocation4], 0  ;;  %s567_s9 = smov [#allocation2]   ;;  %s568_s11 = smov [#allocation5]  }
   0x3   :  { %s16_s10 = sshll.u32 %s567_s9, 4  ;;  %s25_s12 = sshll.u32 %s568_s11, 4  ;;  %s17_s10 = int_to_ptr.vmem [resolvable:$true] %s16_s10  ;;  %s590_s12 = int_to_ptr.vmem [resolvable:$true] %s25_s12 }
   0x4   :  { %s495_s15 = scalar_lea.hbm %s652_s0, 128 }
   0x5   :  { %p496_p0 = scmp.ne.s32.totalorder %s652_s0, %s495_s15  ;;  %p499_p1 = scmp.lt.u32.totalorder %s495_s15, %s652_s0 }
   0x7   :  { %p501_p2 = pnand %p499_p1, %p496_p0 }
   0x9   :  { %504 = shalt.err (!%p501_p2)
}
   0xa   :  { %s505_s20 = scalar_lea.vmem %s17_s10, 128  ;;  %p510_p4 = scmp.lt.s32.totalorder %s17_s10, %s17_s10 }
   0xb   :  { %p506_p3 = scmp.ne.s32.totalorder %s17_s10, %s505_s20  ;;  %p511_p5 = scmp.lt.s32.totalorder %s505_s20, %s505_s20 }
   0xd   :  { %p512_p6 = por %p511_p5, %p510_p4 }
   0xf   :  { %p513_p7 = pnand %p512_p6, %p506_p3 }
  0x11   :  { %516 = shalt.err (!%p513_p7)
}
  0x12   :  { %19 = dma.hbm_to_vmem [thread:$0]  %s652_s0, 128, %s17_s10, [#allocation3]  }
  0x13   :  { %s517_s25 = scalar_lea.hbm %s653_s1, 4352 }
  0x14   :  { %p518_p8 = scmp.ne.s32.totalorder %s653_s1, %s517_s25  ;;  %p521_p9 = scmp.lt.u32.totalorder %s517_s25, %s653_s1 }
  0x16   :  { %p523_p10 = pnand %p521_p9, %p518_p8 }
  0x18   :  { %526 = shalt.err (!%p523_p10)
}
  0x19   :  { %s527_s30 = scalar_lea.vmem %s590_s12, 4352  ;;  %p532_p12 = scmp.lt.s32.totalorder %s590_s12, %s590_s12 }
  0x1a   :  { %p528_p11 = scmp.ne.s32.totalorder %s590_s12, %s527_s30  ;;  %p533_p13 = scmp.lt.s32.totalorder %s527_s30, %s527_s30 }
  0x1c   :  { %p534_p0 = por %p533_p13, %p532_p12 }
  0x1e   :  { %p535_p1 = pnand %p534_p0, %p528_p11 }
  0x20   :  { %538 = shalt.err (!%p535_p1)
}
  0x21   :  { %s569_s0 = smov 128   ;;  %s570_s3 = smov 8  }
  0x22   :  { %31 = dma.hbm_to_vmem [thread:$0]  %s653_s1, 4352, %s590_s12, [#allocation6], %s569_s0, %s569_s0, %s570_s3  }
  0x23   :  { %561 = dma.done.wait [#allocation3], 128  }
  0x24   :  { %562 = vsyncadd [#allocation3], 4294967168 }
  0x25   :  { %563 = dma.done.wait [#allocation6], 4352  }
  0x26   :  { %564 = vsyncadd [#allocation6], 4294962944  ;;  %v571_v0 = vmov 0.0   ;;  %vm572_vm0 = vmmov 0   ;;  %v573_v1 = vmov 0.0|0.0   ;;  %vm79_vm1 = vcmask 64512  }
  0x27   :  { %362 = vmatprep.subr.mxu0 %v571_v0  ;;  %364 = vmatprep.mubr.msk.f32.mxu0 %vm572_vm0, %v571_v0  ;;  %v39_v2 = vld [vmem:[#allocation5] sm:$0xff]  ;;  %v38_v3 = vld [vmem:[#allocation2] sm:$0xff]  ;;  %v40_v4 = vld [vmem:[#allocation5 + $0x8] sm:$0xff]  ;;  %s574_s1 = smov [#allocation7]  }
  0x28   :  { %437 = vmatprep.subr.bf16.mxu1 %v573_v1  ;;  %399 = vmatprep.mubr.msk.f32.mxu1 %vm572_vm0, %v571_v0  ;;  %v41_v5 = vld [vmem:[#allocation5 + $0x10] sm:$0xff]  ;;  %v42_v6 = vld [vmem:[#allocation5 + $0x18] sm:$0xff]  ;;  %v43_v7 = vld [vmem:[#allocation5 + $0x20] sm:$0xff]  ;;  %s312_s6 = sshll.u32 %s574_s1, 4  ;;  %s313_s6 = int_to_ptr.vmem [resolvable:$true] %s312_s6 }
  0x29   :  { %363 = vmatpush3.msra.mxu0 %v39_v2  ;;  %v438_v8 = vpack.c.bf16 %v41_v5, %v40_v4  ;;  %v441_v9 = vpack.c.bf16 %v43_v7, %v42_v6  ;;  %v44_v10 = vld [vmem:[#allocation5 + $0x28] sm:$0xff]  ;;  %v45_v11 = vld [vmem:[#allocation5 + $0x30] sm:$0xff]  ;;  %v46_v13 = vld [vmem:[#allocation5 + $0x38] sm:$0xff]  ;;  %s539_s7 = scalar_lea.vmem %s313_s6, 128  ;;  %p544_p3 = scmp.lt.s32.totalorder %s313_s6, %s313_s6 }
  0x2a   :  { %365 = vmatmul.mubr.msk.f32.vlgmr.msra.gmra.mrb[0].mxu0 %vm79_vm1, %v38_v3  ;;  %461 = vmatprep.subr.bf16.mxu0 %v573_v1  ;;  %v444_v12 = vpack.c.bf16 %v45_v11, %v44_v10  ;;  %v47_v14 = vld [vmem:[#allocation5 + $0x40] sm:$0xff]  ;;  %v48_v16 = vld [vmem:[#allocation5 + $0x48] sm:$0xff]  ;;  %v49_v17 = vld [vmem:[#allocation5 + $0x50] sm:$0xff]  ;;  %p540_p2 = scmp.ne.s32.totalorder %s313_s6, %s539_s7  ;;  %p545_p4 = scmp.lt.s32.totalorder %s539_s7, %s539_s7 }
  0x2b   :  { %434 = vmatprep.mubr.msk.f32.mxu0 %vm572_vm0, %v571_v0  ;;  %439 = vmatpush3.bf16.msra.mxu1 %v438_v8  ;;  %v447_v15 = vpack.c.bf16 %v47_v14, %v46_v13  ;;  %v450_v18 = vpack.c.bf16 %v49_v17, %v48_v16  ;;  %v50_v19 = vld [vmem:[#allocation5 + $0x58] sm:$0xff]  ;;  %v51_v20 = vld [vmem:[#allocation5 + $0x60] sm:$0xff]  ;;  %v52_v22 = vld [vmem:[#allocation5 + $0x68] sm:$0xff] }
  0x2c   :  { %440 = vmatprep.subr.bf16.mxu1 %v573_v1  ;;  %v453_v21 = vpack.c.bf16 %v51_v20, %v50_v19  ;;  %v53_v23 = vld [vmem:[#allocation5 + $0x70] sm:$0xff]  ;;  %v54_v25 = vld [vmem:[#allocation5 + $0x78] sm:$0xff]  ;;  %v55_v26 = vld [vmem:[#allocation5 + $0x80] sm:$0xff]  ;;  %p546_p5 = por %p545_p4, %p544_p3 }
  0x2d   :  { %v456_v24 = vpack.c.bf16 %v53_v23, %v52_v22  ;;  %v459_v27 = vpack.c.bf16 %v55_v26, %v54_v25  ;;  %v56_v28 = vld [vmem:[#allocation5 + $0x88] sm:$0xff]  ;;  %v57_v29 = vld [vmem:[#allocation5 + $0x90] sm:$0xff]  ;;  %v58_v30 = vld [vmem:[#allocation5 + $0x98] sm:$0xff] }
  0x2e   :  { %v462_v31 = vpack.c.bf16 %v57_v29, %v56_v28  ;;  %v59_v32 = vld [vmem:[#allocation5 + $0xa0] sm:$0xff]  ;;  %v60_v34 = vld [vmem:[#allocation5 + $0xa8] sm:$0xff]  ;;  %v61_v35 = vld [vmem:[#allocation5 + $0xb0] sm:$0xff]  ;;  %p547_p6 = pnand %p546_p5, %p540_p2 }
  0x2f   :  { %442 = vmatpush3.bf16.msra.mxu1 %v441_v9  ;;  %v465_v33 = vpack.c.bf16 %v59_v32, %v58_v30  ;;  %v468_v36 = vpack.c.bf16 %v61_v35, %v60_v34  ;;  %v62_v37 = vld [vmem:[#allocation5 + $0xb8] sm:$0xff]  ;;  %v63_v38 = vld [vmem:[#allocation5 + $0xc0] sm:$0xff]  ;;  %v64_v40 = vld [vmem:[#allocation5 + $0xc8] sm:$0xff] }
  0x30   :  { %443 = vmatprep.subr.bf16.mxu1 %v573_v1  ;;  %463 = vmatpush3.bf16.msra.mxu0 %v462_v31  ;;  %v471_v39 = vpack.c.bf16 %v63_v38, %v62_v37  ;;  %v65_v41 = vld [vmem:[#allocation5 + $0xd0] sm:$0xff]  ;;  %v66_v43 = vld [vmem:[#allocation5 + $0xd8] sm:$0xff]  ;;  %v67_v44 = vld [vmem:[#allocation5 + $0xe0] sm:$0xff] }
  0x31   :  { %464 = vmatprep.subr.bf16.mxu0 %v573_v1  ;;  %v474_v42 = vpack.c.bf16 %v65_v41, %v64_v40  ;;  %v477_v45 = vpack.c.bf16 %v67_v44, %v66_v43  ;;  %v68_v46 = vld [vmem:[#allocation5 + $0xe8] sm:$0xff]  ;;  %v69_v47 = vld [vmem:[#allocation5 + $0xf0] sm:$0xff]  ;;  %v70_v54 = vld [vmem:[#allocation5 + $0xf8] sm:$0xff] }
  0x32   :  { %v480_v48 = vpack.c.bf16 %v69_v47, %v68_v46  ;;  %v322_v49 = vld [vmem:[#allocation5 + $0x108] ss:$0 sm:$0xff]  ;;  %v71_v55 = vld [vmem:[#allocation5 + $0x100] sm:$0xff]  ;;  %v324_v57 = vld [vmem:[#allocation5 + $0x109] ss:$0 sm:$0xff] }
  0x33   :  { %445 = vmatpush3.bf16.msra.mxu1 %v444_v12  ;;  %v483_v56 = vpack.c.bf16 %v71_v55, %v70_v54  ;;  %v325_v62 = vld [vmem:[#allocation5 + $0x10a] ss:$0 sm:$0xff] }
  0x34   :  { %446 = vmatprep.subr.bf16.mxu1 %v573_v1  ;;  %466 = vmatpush3.bf16.msra.mxu0 %v465_v33 }
  0x35   :  { %467 = vmatprep.subr.bf16.mxu0 %v573_v1 }
  0x37   :  { %448 = vmatpush3.bf16.msra.mxu1 %v447_v15 }
  0x38   :  { %449 = vmatprep.subr.bf16.mxu1 %v573_v1  ;;  %469 = vmatpush3.bf16.msra.mxu0 %v468_v36 }
  0x39   :  { %470 = vmatprep.subr.bf16.mxu0 %v573_v1 }
  0x3b   :  { %451 = vmatpush3.bf16.msra.mxu1 %v450_v18 }
  0x3c   :  { %452 = vmatprep.subr.bf16.mxu1 %v573_v1  ;;  %472 = vmatpush3.bf16.msra.mxu0 %v471_v39 }
  0x3d   :  { %473 = vmatprep.subr.bf16.mxu0 %v573_v1 }
  0x3f   :  { %454 = vmatpush3.bf16.msra.mxu1 %v453_v21 }
  0x40   :  { %455 = vmatprep.subr.bf16.mxu1 %v573_v1  ;;  %475 = vmatpush3.bf16.msra.mxu0 %v474_v42 }
  0x41   :  { %476 = vmatprep.subr.bf16.mxu0 %v573_v1 }
  0x43   :  { %457 = vmatpush3.bf16.msra.mxu1 %v456_v24 }
  0x44   :  { %458 = vmatprep.subr.bf16.mxu1 %v573_v1  ;;  %478 = vmatpush3.bf16.msra.mxu0 %v477_v45 }
  0x45   :  { %479 = vmatprep.subr.bf16.mxu0 %v573_v1 }
  0x47   :  { %460 = vmatpush3.bf16.msra.mxu1 %v459_v27 }
  0x48   :  { %481 = vmatpush3.bf16.msra.mxu0 %v480_v48 }
  0x49   :  { %482 = vmatprep.subr.bf16.mxu0 %v573_v1 }
  0x4c   :  { %484 = vmatpush3.bf16.msra.mxu0 %v483_v56 }
  0xfd   :  { %v149_v50 = vpop.f32.mrb[0].mxu0 }
  0xfe   :  { %v150_v51 = vadd.f32 %v322_v49, %v149_v50  ;;  %v366_v52 = vpop.f32.mrb[1].mxu0 }
 0x100   :  { %v153_v53 = vmax.f32 %v150_v51, 0.0 }
 0x102   :  { %400 = vmatmul.mubr.f32.vlgmr.msra.gmra.mrb[0].mxu1 %v153_v53 }
 0x1d5   :  { %v224_v58 = vpop.f32.mrb[0].mxu1 }
 0x1d6   :  { %v225_v59 = vadd.f32 %v324_v57, %v224_v58  ;;  %v401_v60 = vpop.f32.mrb[1].mxu1 }
 0x1d8   :  { %v228_v61 = vmax.f32 %v225_v59, 0.0 }
 0x1da   :  { %435 = vmatmul.mubr.f32.vlgmr.msra.gmra.mrb[2].mxu0 %v228_v61 }
 0x2ad   :  { %v299_v63 = vpop.f32.mrb[2].mxu0 }
 0x2ae   :  { %v300_v0 = vadd.f32 %v325_v62, %v299_v63  ;;  %v436_v1 = vpop.f32.mrb[3].mxu0 }
 0x2b0   :  { %493 = vtanh.f32 %v300_v0 }
 0x2ba   :  { %v494_v2 = vpop.eup %493 }
 0x2bb   :  { %v304_v3 = vmul.f32 10.0, %v494_v2 }
 0x2bd   :  { %305 = vst [vmem:[#allocation7] sm:$0xff] %v304_v3 }
 0x2be   :  { %550 = shalt.err (!%p547_p6)
}
 0x2bf   :  { %s551_s10 = scalar_lea.hbm %s654_s2, 128 }
 0x2c0   :  { %p552_p7 = scmp.ne.s32.totalorder %s654_s2, %s551_s10  ;;  %p555_p8 = scmp.lt.u32.totalorder %s551_s10, %s654_s2 }
 0x2c2   :  { %p557_p9 = pnand %p555_p8, %p552_p7 }
 0x2c4   :  { %560 = shalt.err (!%p557_p9)
}
 0x2c5   :  { %315 = dma.vmem_to_hbm [thread:$0]  %s313_s6, 128, %s654_s2, [#allocation4]  }
 0x2c6   :  { %565 = dma.done.wait [#allocation4], 128  }
 0x2c7   :  { %566 = vsyncadd [#allocation4], 4294967168 }
 0x2c8   :  { %319 = vsyncpa [#allocation3], 1 }
 0x2c9   :  { %320 = vsyncpa [#allocation6], 1 }
 0x2ca   :  { %321 = vsyncpa [#allocation4], 1 }

</bundles_post_ra>
